<compile_context>
chip_gen: v7x
topology: tpu7x:2x2x1
jax: 0.10.0
libtpu: 0.0.40
codegen_flags: <defaults>
</compile_context>

<pallas_src>
import functools

import jax
import jax.numpy as jnp
from jax.experimental import pallas as pl
from jax.experimental.pallas import tpu as pltpu


def _round_up(x: int, m: int) -> int:
    return ((x + m - 1) // m) * m


def _cdiv(a: int, b: int) -> int:
    return -(-a // b)


def _focal_loss_kernel(x_ref, t_ref, wy_ref, o_ref, *,
                       rows_last: int, needs_mask: bool, gamma):
    i = pl.program_id(0)

    x = x_ref[...].astype(jnp.float32)        # (TN, C)   logits, math in f32
    t = t_ref[...]                            # (TN, 1)   int32 target class
    w_y = wy_ref[...]                         # (TN, 1)   f32 weight[target]

    # numerically-stable log-sum-exp along the class (lane) axis;
    # Mosaic masks the physically padded lanes of a full-dim block in the
    # max / sum reductions, so a non-128-multiple C needs no explicit pad.
    m = jnp.max(x, axis=-1, keepdims=True)
    lse = m + jnp.log(jnp.sum(jnp.exp(x - m), axis=-1, keepdims=True))   # (TN, 1)

    # select the target logit: single-row lane iota broadcast against targets
    col = jax.lax.broadcasted_iota(jnp.int32, (1, x.shape[1]), 1)        # (1, C)
    x_y = jnp.sum(jnp.where(col == t, x, 0.0), axis=-1, keepdims=True)   # (TN, 1)

    # weighted per-row cross-entropy (reduction='none'), then the focal term
    ce = w_y * (lse - x_y)                    # -w[y] * logp[y]
    pt = jnp.exp(-ce)
    d = 1.0 - pt
    if gamma == 2:                            # module default: explicit square
        mod = d * d
    elif isinstance(gamma, int) and gamma >= 0:
        mod = jnp.ones_like(d)
        for _ in range(gamma):
            mod = mod * d
    else:
        mod = d ** gamma
    focal = mod * ce                          # (TN, 1)

    def write(val):
        # lane/sublane-dense (1, 8, 128) partial-sum slab (unmasked full store)
        o_ref[...] = jnp.full(o_ref.shape, jnp.sum(val), dtype=jnp.float32)

    if needs_mask:
        last = pl.num_programs(0) - 1

        @pl.when(i == last)
        def _():
            # only the ragged last block contains out-of-bounds (garbage) rows
            row = jax.lax.broadcasted_iota(jnp.int32, focal.shape, 0)
            write(jnp.where(row < rows_last, focal, 0.0))

        @pl.when(i != last)
        def _():
            write(focal)
    else:
        write(focal)


def focal_loss(inputs, targets, weight, *, gamma=2, reduction="mean",
               tile_n=None, logits_target_bytes=4 * 1024 * 1024,
               logits_buffers=2):
    """inputs: (N, C) float logits (f32/bf16); targets: (N,) int; weight: (C,)."""
    if reduction not in ("mean", "sum"):
        # TODO(synk): reduction='none' (per-sample vector output) not lowered here.
        raise ValueError("only 'mean' and 'sum' reductions are implemented")

    N, C = inputs.shape
    itemsize = jnp.dtype(inputs.dtype).itemsize

    # --- tiny-batch guard: keep the sublane block dim >= 8 without OOB blocks ---
    n_rows = N
    if N < 8:
        pad = 8 - N
        inputs = jnp.pad(inputs, ((0, pad), (0, 0)))
        targets = jnp.pad(targets, ((0, pad),))
        n_rows = 8

    # --- generation-aware VMEM budget (v7x has 64 MiB/TC, v5e/v6e 128 MiB) ---
    try:
        info = pltpu.get_tpu_info()
        vmem_capacity = int(getattr(info, "vmem_capacity_bytes", 0)) or 64 * 1024 * 1024
    except Exception:  # pragma: no cover - conservative fallback
        vmem_capacity = 64 * 1024 * 1024
    vmem_limit = min(int(vmem_capacity * 0.7), vmem_capacity - 8 * 1024 * 1024)
    vmem_limit = max(vmem_limit, 32 * 1024 * 1024)

    # --- row tile: hit a per-step logits byte target, bounded by the honest
    #     VMEM working set (pipelined logits + lane-padded side streams + ~4
    #     live f32 intermediates), and keep >= 2 grid steps for v7x's 2 TCs. ---
    c_phys = _round_up(C, 128)                     # physical lane width in VMEM
    per_row_bytes = (
        logits_buffers * c_phys * itemsize         # pipelined logits stream
        + 2 * 2 * 128 * 4                          # targets + w[y] tiles, x2 buffers
        + 4 * c_phys * 4                           # ~4 live f32 intermediates
    )
    working_budget = vmem_limit - 4 * 1024 * 1024  # headroom for out slab/scratch
    if tile_n is None:
        rows_by_target = logits_target_bytes // max(c_phys * itemsize, 1)
        rows_by_vmem = working_budget // per_row_bytes
        tile_n = int(min(rows_by_target, rows_by_vmem))
    tile_n = max(8, (int(tile_n) // 8) * 8)
    two_step_cap = max(8, _round_up(_cdiv(n_rows, 2), 8))
    tile_n = min(tile_n, two_step_cap)

    grid = _cdiv(n_rows, tile_n)
    rows_last = N - (grid - 1) * tile_n            # valid rows in the last block
    needs_mask = rows_last != tile_n

    # Hoisted O(N) gathers: targets column and per-row class weight.
    t2d = targets.astype(jnp.int32).reshape(n_rows, 1)
    wy2d = weight.astype(jnp.float32)[targets].reshape(n_rows, 1)

    kernel = functools.partial(_focal_loss_kernel, rows_last=rows_last,
                               needs_mask=needs_mask, gamma=gamma)

    if logits_buffers == 2:
        logits_spec = pl.BlockSpec((tile_n, C), lambda i: (i, 0))
    else:
        # Optional deeper pipelining for DMA-exposed shapes on v5e.
        logits_spec = pl.BlockSpec((tile_n, C), lambda i: (i, 0),
                                   pipeline_mode=pl.Buffered(logits_buffers))

    partials = pl.pallas_call(
        kernel,
        out_shape=jax.ShapeDtypeStruct((grid, 8, 128), jnp.float32),
        grid_spec=pltpu.PrefetchScalarGridSpec(
            num_scalar_prefetch=0,
            grid=(grid,),
            in_specs=[
                logits_spec,                                   # (tile_n, C) logits
                pl.BlockSpec((tile_n, 1), lambda i: (i, 0)),   # target indices
                pl.BlockSpec((tile_n, 1), lambda i: (i, 0)),   # weight[target]
            ],
            out_specs=pl.BlockSpec((1, 8, 128), lambda i: (i, 0, 0)),
        ),
        compiler_params=pltpu.CompilerParams(
            # independent per-block partials -> shardable across both TCs on v7x
            dimension_semantics=("parallel",),
            vmem_limit_bytes=int(vmem_limit),
        ),
    )(inputs, t2d, wy2d)

    total = jnp.sum(partials[:, 0, 0])
    if reduction == "sum":
        return total
    return total / jnp.float32(N)


def focal_loss_ref(inputs, targets, weight, gamma=2):
    x = inputs.astype(jnp.float32)
    logp = jax.nn.log_softmax(x, axis=-1)
    onehot = jax.nn.one_hot(targets, x.shape[1], dtype=jnp.float32)
    ce = -jnp.sum(weight[None, :].astype(jnp.float32) * onehot * logp, axis=-1)
    pt = jnp.exp(-ce)
    return jnp.mean((1.0 - pt) ** gamma * ce)


if __name__ == "__main__":
    key = jax.random.PRNGKey(0)

    # Test 1: f32 logits, batch=16, classes=32 (non-128 class dim, no row pad).
    N, C = 16, 32
    k1, k2 = jax.random.split(key)
    inputs = jax.random.normal(k1, (N, C), dtype=jnp.float32)
    targets = jax.random.randint(k2, (N,), 0, C, dtype=jnp.int32)
    weight = jnp.linspace(0.5, 1.5, C, dtype=jnp.float32)

    out = focal_loss(inputs, targets, weight)
    jax.block_until_ready(out)
    ref = focal_loss_ref(inputs, targets, weight)
    assert jnp.allclose(out, ref, rtol=1e-5, atol=1e-5), (out, ref)

    # Test 2: bf16 logits, ragged last row block and tiny class dim.
    N2, C2 = 13, 10
    k3, k4 = jax.random.split(k1)
    inputs2 = jax.random.normal(k3, (N2, C2), dtype=jnp.bfloat16)
    targets2 = jax.random.randint(k4, (N2,), 0, C2, dtype=jnp.int32)
    weight2 = jnp.linspace(0.25, 2.0, C2, dtype=jnp.float32)

    out2 = focal_loss(inputs2, targets2, weight2)
    jax.block_until_ready(out2)
    ref2 = focal_loss_ref(inputs2, targets2, weight2)
    assert jnp.allclose(out2, ref2, rtol=1e-5, atol=1e-5), (out2, ref2)

    # Test 3: f32 logits, multi-vreg non-128-aligned class dim + ragged rows.
    N3, C3 = 40, 257
    k5, k6 = jax.random.split(k3)
    inputs3 = jax.random.normal(k5, (N3, C3), dtype=jnp.float32)
    targets3 = jax.random.randint(k6, (N3,), 0, C3, dtype=jnp.int32)
    weight3 = jnp.linspace(0.5, 1.5, C3, dtype=jnp.float32)

    out3 = focal_loss(inputs3, targets3, weight3)
    jax.block_until_ready(out3)
    ref3 = focal_loss_ref(inputs3, targets3, weight3)
    assert jnp.allclose(out3, ref3, rtol=1e-5, atol=1e-5), (out3, ref3)

    print("KERNEL_OK")
</pallas_src>

<mosaic_0001>
module attributes {stable_mosaic.version = 11 : i64} {
  func.func @_focal_loss_kernel(%arg0: i32, %arg1: memref<8x32xf32, #tpu.memory_space<vmem>>, %arg2: memref<8x1xi32, #tpu.memory_space<vmem>>, %arg3: memref<8x1xf32, #tpu.memory_space<vmem>>, %arg4: memref<1x8x128xf32, #tpu.memory_space<vmem>>) attributes {dimension_semantics = [#tpu.dimension_semantics<parallel>], iteration_bounds = array<i64: 2>, scalar_prefetch = 0 : i64, scratch_operands = 0 : i64, tpu.core_type = #tpu.core_type<tc>, window_params = [{transform_indices = @transform_0, window_bounds = array<i64: 8, 32>}, {transform_indices = @transform_1, window_bounds = array<i64: 8, 1>}, {transform_indices = @transform_2, window_bounds = array<i64: 8, 1>}, {transform_indices = @transform_3, window_bounds = array<i64: 1, 8, 128>}]} {
    %c0 = arith.constant 0 : index
    %c0_0 = arith.constant 0 : index
    %0 = vector.load %arg1[%c0, %c0_0] : memref<8x32xf32, #tpu.memory_space<vmem>>, vector<8x32xf32>
    %c0_1 = arith.constant 0 : index
    %c0_2 = arith.constant 0 : index
    %1 = vector.load %arg2[%c0_1, %c0_2] : memref<8x1xi32, #tpu.memory_space<vmem>>, vector<8x1xi32>
    %c0_3 = arith.constant 0 : index
    %c0_4 = arith.constant 0 : index
    %2 = vector.load %arg3[%c0_3, %c0_4] : memref<8x1xf32, #tpu.memory_space<vmem>>, vector<8x1xf32>
    %cst = arith.constant dense<0xFF800000> : vector<8xf32>
    %3 = vector.multi_reduction <maximumf>, %0, %cst [1] : vector<8x32xf32> to vector<8xf32>
    %4 = vector.shape_cast %3 : vector<8xf32> to vector<8x1xf32>
    %5 = vector.broadcast %4 : vector<8x1xf32> to vector<8x32xf32>
    %6 = arith.subf %0, %5 : vector<8x32xf32>
    %7 = math.exp %6 : vector<8x32xf32>
    %cst_5 = arith.constant dense<0.000000e+00> : vector<8xf32>
    %8 = vector.multi_reduction <add>, %7, %cst_5 [1] : vector<8x32xf32> to vector<8xf32>
    %9 = vector.shape_cast %8 : vector<8xf32> to vector<8x1xf32>
    %10 = math.log %9 : vector<8x1xf32>
    %11 = arith.addf %4, %10 : vector<8x1xf32>
    %12 = tpu.iota {dimensions = array<i32: 1>} : vector<1x32xi32>
    %13 = vector.broadcast %12 : vector<1x32xi32> to vector<8x32xi32>
    %14 = vector.broadcast %1 : vector<8x1xi32> to vector<8x32xi32>
    %15 = arith.cmpi eq, %13, %14 : vector<8x32xi32>
    %cst_6 = arith.constant 0.000000e+00 : f32
    %16 = vector.broadcast %cst_6 : f32 to vector<8x32xf32>
    %17 = arith.select %15, %0, %16 : vector<8x32xi1>, vector<8x32xf32>
    %cst_7 = arith.constant dense<0.000000e+00> : vector<8xf32>
    %18 = vector.multi_reduction <add>, %17, %cst_7 [1] : vector<8x32xf32> to vector<8xf32>
    %19 = vector.shape_cast %18 : vector<8xf32> to vector<8x1xf32>
    %20 = arith.subf %11, %19 : vector<8x1xf32>
    %21 = arith.mulf %2, %20 : vector<8x1xf32>
    %cst_8 = arith.constant 0.000000e+00 : f32
    %22 = vector.broadcast %cst_8 : f32 to vector<8x1xf32>
    %23 = arith.subf %22, %21 : vector<8x1xf32>
    %24 = math.exp %23 : vector<8x1xf32>
    %cst_9 = arith.constant 1.000000e+00 : f32
    %25 = vector.broadcast %cst_9 : f32 to vector<8x1xf32>
    %26 = arith.subf %25, %24 : vector<8x1xf32>
    %27 = arith.mulf %26, %26 : vector<8x1xf32>
    %28 = arith.mulf %27, %21 : vector<8x1xf32>
    %29 = vector.shape_cast %28 : vector<8x1xf32> to vector<1x8x1xf32>
    %cst_10 = arith.constant dense<0.000000e+00> : vector<1xf32>
    %30 = vector.multi_reduction <add>, %29, %cst_10 [1, 2] : vector<1x8x1xf32> to vector<1xf32>
    %31 = vector.shape_cast %30 : vector<1xf32> to vector<1x1x1xf32>
    %32 = vector.extract %31[0, 0, 0] : f32 from vector<1x1x1xf32>
    %33 = vector.broadcast %32 : f32 to vector<1x8x128xf32>
    %c0_11 = arith.constant 0 : index
    %c0_12 = arith.constant 0 : index
    %c0_13 = arith.constant 0 : index
    %34 = vector.load %arg4[%c0_11, %c0_12, %c0_13] : memref<1x8x128xf32, #tpu.memory_space<vmem>>, vector<1x8x128xf32>
    tpu.vector_store %arg4[%c0_11, %c0_12, %c0_13], %33 {strides = array<i32>} : memref<1x8x128xf32, #tpu.memory_space<vmem>>, vector<1x8x128xf32>,
    return
  }
  func.func @transform_0(%arg0: i32) -> (i32, i32) {
    %c0_i32 = arith.constant 0 : i32
    %c0_i32_0 = arith.constant 0 : i32
    return %arg0, %c0_i32 : i32, i32
  }
  func.func @transform_1(%arg0: i32) -> (i32, i32) {
    %c0_i32 = arith.constant 0 : i32
    %c0_i32_0 = arith.constant 0 : i32
    return %arg0, %c0_i32 : i32, i32
  }
  func.func @transform_2(%arg0: i32) -> (i32, i32) {
    %c0_i32 = arith.constant 0 : i32
    %c0_i32_0 = arith.constant 0 : i32
    return %arg0, %c0_i32 : i32, i32
  }
  func.func @transform_3(%arg0: i32) -> (i32, i32, i32) {
    %c0_i32 = arith.constant 0 : i32
    %c0_i32_0 = arith.constant 0 : i32
    %c0_i32_1 = arith.constant 0 : i32
    return %arg0, %c0_i32, %c0_i32_0 : i32, i32, i32
  }
}

</mosaic_0001>

<bundles_post_ra>
// kernel: tpu_custom_call.1
= control target key start
LH: loop header
LB: loop body
LE: loop exit
PB: predicated region body
PF: predicated region fallthrough
CT: control target
= control target key end

     0   :  { %8 = vsyncpa [#allocation3], 0  ;;  %s605_s0 = inlined_call_operand.vmem [shape: f32[16,32], index: 0, kind: input, shape index: {}]   ;;  %s606_s1 = inlined_call_operand.vmem [shape: s32[16,1], index: 1, kind: input, shape index: {}]   ;;  %s607_s2 = inlined_call_operand.vmem [shape: f32[16,1], index: 2, kind: input, shape index: {}]   ;;  %s608_s3 = inlined_call_operand.hbm [shape: f32[2,8,128], index: 3, kind: output, shape index: {}]  }
   0x1   :  { %10 = vsyncpa [#allocation3 + $0x1], 0  ;;  %s491_s12 = smov 0   ;;  %s493_s13 = smov 0  }
   0x2   :  { %s495_s14 = smov 0   ;;  %s497_s15 = smov 0  }
   0x3 LB: > { %s512_s16 = sadd.s32 4294967295, %s467_s15   ;;  %s344_s17 = sadd.s32 4294967294, %s467_s15   ;;  %s467_s15 = sphi %s497_s15, %s614_s15   ;;  %s463_s14 = sphi %s495_s14, %s613_s14   ;;  %s459_s13 = sphi %s493_s13, %s612_s13   ;;  %s455_s12 = sphi %s491_s12, %s611_s12  }
   0x4   : > { %s516_s18 = sadd.s32 1, %s467_s15   ;;  %s101_s19 = sadd.s32 1, %s463_s14 }
   0x5   : > { %s98_s20 = ssub.s32 %s467_s15, %s516_s18  ;;  %p111_p0 = scmp.ne.s32.totalorder %s463_s14, %s459_s13 }
   0x6   : > { %p99_p1 = scmp.eq.s32.totalorder %s98_s20, 0  ;;  %p112_p2 = scmp.eq.s32.totalorder %s512_s16, 1 }
   0x7   : > { %p117_p3 = scmp.ne.s32.totalorder %s459_s13, %s455_s12  ;;  %p118_p4 = scmp.eq.s32.totalorder %s344_s17, 1 }
   0x8   : > { %s527_s21 = scalar_select %p99_p1, %s463_s14, %s101_s19  }
   0x9   : > { %p529_p5 = por %p112_p2, %p111_p0  ;;  %p533_p6 = por %p118_p4, %p117_p3 }
   0xa   : > { %p347_p7 = scmp.ge.s32.totalorder %s467_s15, 1  ;;  %p157_p8 = scmp.lt.s32.totalorder %s467_s15, 3 }
   0xc   : > { %p158_p9 = pnand %p347_p7, %p157_p8 }
   0xd   : > { %p188_p10 = scmp.lt.s32.totalorder (!%p158_p9), %s512_s16, 1  ;;  %v469_v0 = vmov (!%p158_p9), 0   ;;  %vm203_vm0 = vcmask (!%p158_p9), 261120   ;;  %v216_v7 = vlaneseq (!%p158_p9)  ;;  %vm234_vm2 = vcmask (!%p158_p9), 7168   ;;  %s185_s8 = sand.u32 (!%p158_p9), 1, %s459_s13  }
   0xe   : > { %161 = sbr.rel (%p158_p9) target bundleno = 587 (0x24b), region = 32  ;;  %398 = vset.pattern.permute.xlu0 (!%p158_p9), %v469_v0  ;;  %s348_s9 = sshll.u32 (!%p158_p9), %s185_s8, 3 }
   0xf   : > { %v217_v8 = vand.u32 (!%p158_p9), 127, %v216_v7  ;;  %s187_s10 = scalar_lea.vmem (!%p158_p9), [#allocation2], %s348_s9  ;;  %s353_s17 = sshll.u32 (!%p158_p9), %s512_s16, 7 }
  0x10   : > { %s261_s11 = sshll.u32 (!%p158_p9), %s187_s10, 4  ;;  %s248_s26 = scalar_lea.sflag (!%p158_p9), [#allocation3], %s185_s8  ;;  %s560_s11 = int_to_ptr.vmem [resolvable:$true] %s261_s11 }
  0x11   : > { %s405_s27 = scalar_lea.vmem (!%p158_p9), %s560_s11, 128 }
  0x12   : > { %p406_p11 = scmp.ne.s32.totalorder (!%p158_p9), %s560_s11, %s405_s27 }
  0x14   : > { %p407_p12 = pnand (!%p158_p9), %p406_p11, %p529_p5 }
  0x15   : > { %s189_s24 = scalar_select %p188_p10, %s512_s16, 1 }
  0x16   : > { %p408_p13 = pneg %p407_p12  ;;  %s470_s16 = smov [#allocation2]  }
  0x17   : > { %s541_s25 = sshll.u32 %s189_s24, 3 }
  0x18   : > { %s191_s28 = scalar_lea.vmem %s605_s0, %s541_s25  ;;  %s195_s4 = scalar_lea.vmem %s606_s1, %s541_s25 }
  0x19   : > { %v200_v1 = vld [vmem:[%s191_s28] sm:$0xff]  ;;  %s199_s7 = scalar_lea.vmem %s607_s2, %s541_s25  ;;  %s565_s25 = scalar_lea.hbm %s608_s3, %s353_s17 }
  0x1a   : > { %v204_v2 = vsel %vm203_vm0, %v200_v1, -inf  ;;  %v201_v3 = vld [vmem:[%s195_s4] sm:$0xff]  ;;  %s409_s28 = sshll.u32 %s470_s16, 4  ;;  %s410_s28 = int_to_ptr.vmem [resolvable:$false] %s409_s28 }
  0x1b   : > { %205 = vmax.xlane.f32.xlu0 %v204_v2  ;;  %v202_v19 = vld [vmem:[%s199_s7] sm:$0xff]  ;;  %s411_s29 = scalar_lea.vmem %s410_s28, 256  ;;  %p412_p0 = scmp.lt.s32.totalorder %s560_s11, %s410_s28 }
  0x1c   : > { %p413_p1 = scmp.lt.s32.totalorder %s411_s29, %s405_s27 }
  0x1e   : > { %p414_p2 = por %p413_p1, %p412_p0 }
  0x20   : > { %p415_p3 = pnand %p414_p2, %p408_p13 }
  0x31   : > { %219 = vperm.xlu0 %398, %v201_v3  }
  0xa8   : > { %v206_v4 = vpop.xlane.xlu0 %205 }
  0xa9   : > { %v207_v5 = vsub.f32 %v200_v1, %v206_v4 }
  0xab   : > { %v208_v6 = vmul.f32 1.442695, %v207_v5 }
  0xad   : > { %399 = vpow2.f32 %v208_v6 }
  0xb0   : > { %v220_v9 = vpop.permute.xlu0 %219 }
  0xb1   : > { %vm221_vm1 = vcmp.eq.s32.totalorder %v217_v8, %v220_v9 }
  0xb2   : > { %v222_v11 = vsel %vm221_vm1, %v200_v1, 0.0 }
  0xb3   : > { %v223_v13 = vsel %vm203_vm0, %v222_v11, 0.0 }
  0xb7   : > { %v400_v10 = vpop.eup %399 }
  0xb8   : > { %v210_v12 = vsel %vm203_vm0, %v400_v10, 0.0 }
  0xb9   : > { %211 = vadd.xlane.f32.xlu1 %v210_v12 }
  0xbd   : > { %224 = vadd.xlane.f32.xlu1 %v223_v13 }
 0x146   : > { %v212_v14 = vpop.xlane.xlu1 %211 }
 0x147   : > { %401 = vlog2.f32 %v212_v14 }
 0x14a   : > { %v225_v17 = vpop.xlane.xlu1 %224 }
 0x151   : > { %v402_v15 = vpop.eup %401 }
 0x152   : > { %v214_v16 = vmul.f32 0.6931472, %v402_v15 }
 0x154   : > { %v215_v18 = vadd.f32 %v214_v16, %v206_v4 }
 0x156   : > { %v226_v20 = vsub.f32 %v215_v18, %v225_v17 }
 0x158   : > { %v227_v21 = vmul.f32 %v226_v20, %v202_v19 }
 0x15a   : > { %v228_v22 = vsub.f32 0.0, %v227_v21 }
 0x15c   : > { %v229_v23 = vmul.f32 1.442695, %v228_v22 }
 0x15e   : > { %403 = vpow2.f32 %v229_v23 }
 0x168   : > { %v404_v24 = vpop.eup %403 }
 0x169   : > { %v231_v25 = vsub.f32 1.0, %v404_v24 }
 0x16b   : > { %v232_v26 = vmul.f32 %v231_v25, %v231_v25 }
 0x16d   : > { %v233_v27 = vmul.f32 %v232_v26, %v227_v21 }
 0x16f   : > { %v235_v28 = vsel %vm234_vm2, %v233_v27, 0.0 }
 0x170   : > { %236 = vadd.xlane.f32.xlu1 %v235_v28 }
 0x1fd   : > { %v237_v29 = vpop.xlane.xlu1 %236 }
 0x1fe   : > { %v238_v30 = vrot.slane %v237_v29, 4 }
 0x200   : > { %v239_v31 = vadd.f32 %v238_v30, %v237_v29 }
 0x202   : > { %v240_v32 = vrot.slane %v239_v31, 2 }
 0x204   : > { %v241_v33 = vadd.f32 %v240_v32, %v239_v31 }
 0x206   : > { %v242_v34 = vrot.slane %v241_v33, 1 }
 0x208   : > { %v243_v35 = vadd.f32 %v242_v34, %v241_v33 }
 0x20a   : > { %356 = vpush %v243_v35 }
 0x23b   : > { %s357_s19 = spop %356 }
 0x23c   : > { %v245_v36 = vstv %s357_s19 }
 0x23d   : > { %246 = vst [vmem:[%s187_s10] sm:$0xff] %v245_v36 }
 0x23e   : > { %418 = shalt.err (!%p415_p3)
}
 0x23f   : > { %s419_s30 = scalar_lea.hbm %s565_s25, 128  ;;  %s423_s6 = scalar_lea.hbm %s608_s3, 256 }
 0x240   : > { %p420_p4 = scmp.ne.s32.totalorder %s565_s25, %s419_s30  ;;  %p424_p9 = scmp.lt.u32.totalorder %s565_s25, %s608_s3 }
 0x241   : > { %p425_p10 = scmp.lt.u32.totalorder %s423_s6, %s419_s30  ;;  %p427_p12 = scmp.lt.u32.totalorder %s419_s30, %s565_s25 }
 0x242   : > { %p421_p7 = pnand %p420_p4, %p529_p5 }
 0x243   : > { %p426_p11 = por %p425_p10, %p424_p9 }
 0x244   : > { %p422_p8 = pneg %p421_p7 }
 0x245   : > { %p428_p13 = por %p427_p12, %p426_p11 }
 0x247   : > { %p429_p0 = pnand %p428_p13, %p422_p8 }
 0x249   : > { %432 = shalt.err (!%p429_p0)
}
 0x24a   : > { %358 = dma.vmem_to_hbm [thread:$0]  (%p529_p5), %s560_s11, 128, %s565_s25, %s248_s26  }
 0x24b PF: > { %p364_p1 = scmp.ge.s32.totalorder %s467_s15, 2  ;;  %s273_s9 = sand.u32 1, %s455_s12  }
 0x24c   : > { %s274_s10 = scalar_lea.sflag [#allocation3], %s273_s9 }
 0x24d   : > { %p361_p2 = pnand %p364_p1, %p533_p6 }
 0x24f   : > { %450 = dma.done.wait (!%p361_p2), %s274_s10, 128  }
 0x250   : > { %452 = vsyncadd (!%p361_p2), %s274_s10, 4294967168  ;;  %p13_p3 = scmp.ge.s32.totalorder %s516_s18, 4   ;;  %s611_s12 = smov %s459_s13 }
 0x251   : > { %s612_s13 = smov %s463_s14  ;;  %s613_s14 = smov %s527_s21 }
 0x252   : > { %s614_s15 = smov %s516_s18  ;;  %15 = sbr.rel (!%p13_p3) target bundleno = 3 (0x3), region = 73 }
 0x259   :  { %279 = vsyncpa [#allocation3], 1 }
 0x25a   :  { %281 = vsyncpa [#allocation3 + $0x1], 1 }

</bundles_post_ra>
